<compile_context>
chip_gen: v7x
topology: tpu7x:2x2x1
jax: 0.10.0
libtpu: 0.0.40
codegen_flags: <defaults>
</compile_context>

<pallas_src>
import jax
import jax.numpy as jnp
import numpy as np
from jax.experimental import pallas as pl
from jax.experimental.pallas import tpu as pltpu


def vit_embed_kernel(patches_ref, w_ref, posb_ref, o_ref):
    # patches_ref: (1, tm, K)       compute_dtype patch rows (row 0 of the
    #                               first tile is the all-zero cls row)
    # w_ref:       (K, hidden)      full weight, resident in VMEM (index (0,0))
    # posb_ref:    (tm, hidden)     row 0: cls_token + pos[0]
    #                               rows 1..: pos[1:] + conv bias
    # o_ref:       (1, tm, hidden)  output tile
    acc = jnp.dot(patches_ref[0], w_ref[...],
                  preferred_element_type=jnp.float32)          # (tm, hidden) f32
    o_ref[0] = (acc + posb_ref[...].astype(jnp.float32)).astype(o_ref.dtype)


def _pick_tile(dim, target):
    """(padded_dim, tile): full-extent block for small dims, otherwise pad to
    a multiple of `target` and tile by `target` (target is a multiple of 8)."""
    if dim <= target:
        return dim, dim
    padded = -(-dim // target) * target
    return padded, target


def vit_embeddings(x, conv_w, conv_b, cls_token, pos_emb, patch_size,
                   *, compute_dtype=jnp.bfloat16, out_dtype=None,
                   tm_target=512):
    """x: (B, C, H, W) NCHW.  Returns (B, n_patches + 1, hidden)."""
    B, C, H, W = x.shape
    ph, pw = patch_size
    gh, gw = H // ph, W // pw
    n_patches = gh * gw
    hidden = conv_w.shape[0]
    K = C * ph * pw
    M = n_patches + 1                      # +1 for the cls row
    out_dtype = x.dtype if out_dtype is None else out_dtype

    # ---- glue: extract non-overlapping patches (layout plumbing only) ----
    # Cast to compute_dtype BEFORE the transpose so the materialized
    # (B, n_patches, K) pass moves half the bytes.
    # TODO(synk): a fully fused version would gather patches in-kernel from an
    # NHWC-laid-out x via pl.ANY + manual make_async_copy instead of
    # materializing (B, n_patches, K) in HBM.
    patches = (x.astype(compute_dtype)
               .reshape(B, C, gh, ph, gw, pw)
               .transpose(0, 2, 4, 1, 3, 5)
               .reshape(B, n_patches, K))

    # ---- M tiling (seq dim includes the cls row) ----
    m_pad, tm = _pick_tile(M, tm_target)

    # Single pad op: prepend the zero cls row and append tail padding.
    patches = jnp.pad(patches, ((0, 0), (1, m_pad - M), (0, 0)))

    # Conv weight (hidden, C, ph, pw) -> (K, hidden); flattening order
    # (C, ph, pw) matches the patch flattening above.  Stays resident in VMEM.
    w_mat = conv_w.reshape(hidden, K).T.astype(compute_dtype)

    # Fused additive term, streamed in compute_dtype (halves its DMA bytes):
    #   row 0      : cls_token + pos[0]          (NO conv bias)
    #   rows 1..M-1: pos[1:]   + conv bias
    pos = pos_emb.reshape(M, hidden).astype(jnp.float32)
    cls_row = cls_token.reshape(1, hidden).astype(jnp.float32) + pos[0:1, :]
    patch_rows = pos[1:, :] + conv_b.reshape(1, hidden).astype(jnp.float32)
    posb = jnp.concatenate([cls_row, patch_rows], axis=0).astype(compute_dtype)
    if m_pad != M:
        posb = jnp.pad(posb, ((0, m_pad - M), (0, 0)))

    # ---- pallas_call: grid = (M_tiles, B), batch innermost ----
    grid = (m_pad // tm, B)
    out = pl.pallas_call(
        vit_embed_kernel,
        out_shape=jax.ShapeDtypeStruct((B, m_pad, hidden), out_dtype),
        grid_spec=pltpu.PrefetchScalarGridSpec(
            num_scalar_prefetch=0,
            grid=grid,
            in_specs=[
                # per-(batch, M-tile) patch rows, full K per block
                pl.BlockSpec((1, tm, K), lambda i, b: (b, i, 0)),
                # grid-invariant full weight: fetched once, stays in VMEM
                pl.BlockSpec((K, hidden), lambda i, b: (0, 0)),
                # posb depends only on i -> reused across consecutive b steps
                pl.BlockSpec((tm, hidden), lambda i, b: (i, 0)),
            ],
            out_specs=pl.BlockSpec((1, tm, hidden), lambda i, b: (b, i, 0)),
        ),
        compiler_params=pltpu.CompilerParams(
            # no reduction axis (K stays whole in one block)
            dimension_semantics=("parallel", "parallel"),
            vmem_limit_bytes=32 * 1024 * 1024),
    )(patches, w_mat, posb)

    if m_pad != M:
        # TODO(synk): for ragged high-res configs this slice is an extra HBM
        # pass; masked stores on the last M tile would remove it.
        out = out[:, :M, :]

    # Dropout: inference-mode identity.
    # TODO(synk): training-mode dropout (hidden_dropout_prob) not applied.
    # TODO(synk): no position-embedding interpolation for mismatched img size.
    return out


def _reference(x, conv_w, conv_b, cls_token, pos_emb, patch_size):
    """Pure-JAX reference mirroring the PyTorch forward exactly (f32)."""
    B = x.shape[0]
    y = jax.lax.conv_general_dilated(
        x, conv_w, window_strides=patch_size, padding="VALID",
        dimension_numbers=("NCHW", "OIHW", "NCHW"))
    y = y + conv_b.reshape(1, -1, 1, 1)
    y = y.reshape(B, y.shape[1], -1)           # flatten(2)
    y = jnp.transpose(y, (0, 2, 1))            # transpose(-1, -2)
    cls = jnp.broadcast_to(cls_token, (B, 1, cls_token.shape[-1]))
    y = jnp.concatenate([cls, y], axis=1)
    return y + pos_emb


if __name__ == "__main__":
    # Small config: img 16x16, patch 8x8, in_channels=3, hidden=32
    B, C, H, W = 2, 3, 16, 16
    patch_size = (8, 8)
    hidden = 32
    n_patches = (H // patch_size[0]) * (W // patch_size[1])

    key = jax.random.PRNGKey(0)
    k_x, k_w, k_b, k_cls, k_pos = jax.random.split(key, 5)

    x = jax.random.normal(k_x, (B, C, H, W), dtype=jnp.float32)
    conv_w = jax.random.normal(k_w, (hidden, C, patch_size[0], patch_size[1]),
                               dtype=jnp.float32) * 0.02
    conv_b = jax.random.normal(k_b, (hidden,), dtype=jnp.float32) * 0.02
    cls_token = jax.random.normal(k_cls, (1, 1, hidden), dtype=jnp.float32) * 0.02
    pos_emb = jax.random.normal(k_pos, (1, n_patches + 1, hidden),
                                dtype=jnp.float32) * 0.02

    ref = _reference(x, conv_w, conv_b, cls_token, pos_emb, patch_size)

    # 1) f32 compute path: validates kernel structure (patch order, bias/pos
    #    folding, in-kernel cls row) tightly against the conv reference.
    out_f32 = vit_embeddings(x, conv_w, conv_b, cls_token, pos_emb, patch_size,
                             compute_dtype=jnp.float32)
    out_f32 = jax.block_until_ready(out_f32)
    np.testing.assert_allclose(np.asarray(out_f32), np.asarray(ref),
                               rtol=1e-5, atol=1e-5)

    # 2) default bf16 compute path (MXU-native): validated to bf16 precision.
    out_bf16 = vit_embeddings(x, conv_w, conv_b, cls_token, pos_emb, patch_size)
    out_bf16 = jax.block_until_ready(out_bf16)
    np.testing.assert_allclose(np.asarray(out_bf16), np.asarray(ref),
                               rtol=2e-2, atol=2e-2)

    print("KERNEL_OK")
</pallas_src>

<mosaic_0001>
module attributes {stable_mosaic.version = 11 : i64} {
  func.func @vit_embed_kernel(%arg0: i32, %arg1: i32, %arg2: memref<1x5x192xf32, #tpu.memory_space<vmem>>, %arg3: memref<192x32xf32, #tpu.memory_space<vmem>>, %arg4: memref<5x32xf32, #tpu.memory_space<vmem>>, %arg5: memref<1x5x32xf32, #tpu.memory_space<vmem>>) attributes {dimension_semantics = [#tpu.dimension_semantics<parallel>, #tpu.dimension_semantics<parallel>], iteration_bounds = array<i64: 1, 2>, scalar_prefetch = 0 : i64, scratch_operands = 0 : i64, tpu.core_type = #tpu.core_type<tc>, window_params = [{transform_indices = @transform_0, window_bounds = array<i64: 1, 5, 192>}, {pipeline_mode = #tpu.pipeline_mode<synchronous>, transform_indices = @transform_1, window_bounds = array<i64: 192, 32>}, {transform_indices = @transform_2, window_bounds = array<i64: 5, 32>}, {transform_indices = @transform_3, window_bounds = array<i64: 1, 5, 32>}]} {
    %c0 = arith.constant 0 : index
    %c0_0 = arith.constant 0 : index
    %c0_1 = arith.constant 0 : index
    %0 = vector.load %arg2[%c0, %c0_0, %c0_1] : memref<1x5x192xf32, #tpu.memory_space<vmem>>, vector<1x5x192xf32>
    %1 = vector.shape_cast %0 : vector<1x5x192xf32> to vector<5x192xf32>
    %c0_2 = arith.constant 0 : index
    %c0_3 = arith.constant 0 : index
    %2 = vector.load %arg3[%c0_2, %c0_3] : memref<192x32xf32, #tpu.memory_space<vmem>>, vector<192x32xf32>
    %cst = arith.constant dense<0.000000e+00> : vector<5x32xf32>
    %3 = tpu.matmul %1, %2, %cst {dimension_numbers = #tpu.dot_dimension_numbers<[1], [0], [0], [1], [0, 0, 1, 1], [], []>} : vector<5x192xf32>, vector<192x32xf32>, vector<5x32xf32> -> vector<5x32xf32>
    %c0_4 = arith.constant 0 : index
    %c0_5 = arith.constant 0 : index
    %4 = vector.load %arg4[%c0_4, %c0_5] : memref<5x32xf32, #tpu.memory_space<vmem>>, vector<5x32xf32>
    %5 = arith.addf %3, %4 : vector<5x32xf32>
    %c0_6 = arith.constant 0 : index
    %c0_7 = arith.constant 0 : index
    %c0_8 = arith.constant 0 : index
    %6 = vector.load %arg5[%c0_6, %c0_7, %c0_8] : memref<1x5x32xf32, #tpu.memory_space<vmem>>, vector<1x5x32xf32>
    %7 = vector.shape_cast %6 : vector<1x5x32xf32> to vector<5x32xf32>
    %8 = vector.shape_cast %5 : vector<5x32xf32> to vector<1x5x32xf32>
    tpu.vector_store %arg5[%c0_6, %c0_7, %c0_8], %8 {strides = array<i32>} : memref<1x5x32xf32, #tpu.memory_space<vmem>>, vector<1x5x32xf32>,
    return
  }
  func.func @transform_0(%arg0: i32, %arg1: i32) -> (i32, i32, i32) {
    %c0_i32 = arith.constant 0 : i32
    %c0_i32_0 = arith.constant 0 : i32
    return %arg1, %arg0, %c0_i32 : i32, i32, i32
  }
  func.func @transform_1(%arg0: i32, %arg1: i32) -> (i32, i32) {
    %c0_i32 = arith.constant 0 : i32
    %c0_i32_0 = arith.constant 0 : i32
    %c0_i32_1 = arith.constant 0 : i32
    return %c0_i32, %c0_i32_0 : i32, i32
  }
  func.func @transform_2(%arg0: i32, %arg1: i32) -> (i32, i32) {
    %c0_i32 = arith.constant 0 : i32
    %c0_i32_0 = arith.constant 0 : i32
    return %arg0, %c0_i32 : i32, i32
  }
  func.func @transform_3(%arg0: i32, %arg1: i32) -> (i32, i32, i32) {
    %c0_i32 = arith.constant 0 : i32
    %c0_i32_0 = arith.constant 0 : i32
    return %arg1, %arg0, %c0_i32 : i32, i32, i32
  }
}

</mosaic_0001>

<bundles_post_ra>
// kernel: tpu_custom_call.1
= control target key start
LH: loop header
LB: loop body
LE: loop exit
PB: predicated region body
PF: predicated region fallthrough
CT: control target
= control target key end

     0   :  { %s538_s12 = smov 0   ;;  %s540_s13 = smov 0   ;;  %s654_s0 = inlined_call_operand.vmem [shape: f32[2,5,192], index: 0, kind: input, shape index: {}]   ;;  %s655_s1 = inlined_call_operand.vmem [shape: f32[192,32], index: 1, kind: input, shape index: {}]   ;;  %s656_s2 = inlined_call_operand.vmem [shape: f32[5,32], index: 2, kind: input, shape index: {}]   ;;  %s657_s3 = inlined_call_operand.vmem [shape: f32[2,5,32], index: 3, kind: output, shape index: {}]  }
   0x1   :  { %s542_s14 = smov 0  }
   0x2 LB: > { %s22_s15 = sadd.s32 1, %s511_s13  ;;  %p424_p0 = scmp.ge.s32.totalorder %s515_s14, 1  ;;  %s515_s14 = sphi %s542_s14, %s13_s14   ;;  %s511_s13 = sphi %s540_s13, %s659_s13   ;;  %s507_s12 = sphi %s538_s12, %s658_s12  }
   0x3   : > { %p23_p1 = scmp.ge.s32.totalorder %s22_s15, 2  ;;  %p166_p2 = scmp.lt.s32.totalorder %s515_s14, 3 }
   0x5   : > { %s661_s15 = smov (%p23_p1, %s22_s15), 0  ;;  %p167_p3 = pnand %p424_p0, %p166_p2 }
   0x6   : > { %v222_v0 = vld [vmem:[%s655_s1] sm:$0xff] (!%p167_p3)  ;;  %v223_v1 = vld [vmem:[%s655_s1 + $0x8] sm:$0xff] (!%p167_p3)  ;;  %v224_v2 = vld [vmem:[%s655_s1 + $0x10] sm:$0xff] (!%p167_p3)  ;;  %p200_p4 = scmp.lt.s32.totalorder (!%p167_p3), %s507_s12, 1  ;;  %v517_v3 = vmov (!%p167_p3), 0.0|0.0   ;;  %vm247_vm0 = vcmask (!%p167_p3), 523264  }
   0x7   : > { %170 = sbr.rel (%p167_p3) target bundleno = 271 (0x10f), region = 32  ;;  %432 = vmatprep.subr.bf16.mxu0 (!%p167_p3), %v517_v3  ;;  %v433_v4 = vpack.c.bf16 (!%p167_p3), %v223_v1, %v222_v0  ;;  %v225_v5 = vld [vmem:[%s655_s1 + $0x18] sm:$0xff] (!%p167_p3)  ;;  %v226_v7 = vld [vmem:[%s655_s1 + $0x20] sm:$0xff] (!%p167_p3)  ;;  %v227_v8 = vld [vmem:[%s655_s1 + $0x28] sm:$0xff] (!%p167_p3)  ;;  %vm321_vm1 = vcmask (!%p167_p3), 258048  }
   0x8   : > { %v436_v6 = vpack.c.bf16 (!%p167_p3), %v225_v5, %v224_v2  ;;  %v439_v9 = vpack.c.bf16 (!%p167_p3), %v227_v8, %v226_v7  ;;  %v228_v10 = vld [vmem:[%s655_s1 + $0x30] sm:$0xff] (!%p167_p3)  ;;  %v229_v11 = vld [vmem:[%s655_s1 + $0x38] sm:$0xff] (!%p167_p3)  ;;  %v230_v14 = vld [vmem:[%s655_s1 + $0x40] sm:$0xff] (!%p167_p3) }
   0x9   : > { %434 = vmatpush1.bf16.msra.mxu0 (!%p167_p3), %v433_v4  ;;  %v442_v13 = vpack.c.bf16 (!%p167_p3), %v229_v11, %v228_v10  ;;  %v231_v15 = vld [vmem:[%s655_s1 + $0x48] sm:$0xff] (!%p167_p3)  ;;  %v232_v17 = vld [vmem:[%s655_s1 + $0x50] sm:$0xff] (!%p167_p3)  ;;  %v233_v18 = vld [vmem:[%s655_s1 + $0x58] sm:$0xff] (!%p167_p3) }
   0xa   : > { %435 = vmatprep.subr.bf16.mxu0 (!%p167_p3), %v517_v3  ;;  %v445_v16 = vpack.c.bf16 (!%p167_p3), %v231_v15, %v230_v14  ;;  %v448_v19 = vpack.c.bf16 (!%p167_p3), %v233_v18, %v232_v17  ;;  %v234_v20 = vld [vmem:[%s655_s1 + $0x60] sm:$0xff] (!%p167_p3)  ;;  %v235_v21 = vld [vmem:[%s655_s1 + $0x68] sm:$0xff] (!%p167_p3)  ;;  %v236_v23 = vld [vmem:[%s655_s1 + $0x70] sm:$0xff] (!%p167_p3) }
   0xb   : > { %v451_v22 = vpack.c.bf16 (!%p167_p3), %v235_v21, %v234_v20  ;;  %v237_v24 = vld [vmem:[%s655_s1 + $0x78] sm:$0xff] (!%p167_p3)  ;;  %v238_v26 = vld [vmem:[%s655_s1 + $0x80] sm:$0xff] (!%p167_p3)  ;;  %v239_v27 = vld [vmem:[%s655_s1 + $0x88] sm:$0xff] (!%p167_p3) }
   0xc   : > { %v454_v25 = vpack.c.bf16 (!%p167_p3), %v237_v24, %v236_v23  ;;  %v457_v28 = vpack.c.bf16 (!%p167_p3), %v239_v27, %v238_v26  ;;  %v240_v29 = vld [vmem:[%s655_s1 + $0x90] sm:$0xff] (!%p167_p3)  ;;  %v241_v30 = vld [vmem:[%s655_s1 + $0x98] sm:$0xff] (!%p167_p3)  ;;  %v242_v32 = vld [vmem:[%s655_s1 + $0xa0] sm:$0xff] (!%p167_p3) }
   0xd   : > { %437 = vmatpush1.bf16.msra.mxu0 (!%p167_p3), %v436_v6  ;;  %v460_v31 = vpack.c.bf16 (!%p167_p3), %v241_v30, %v240_v29  ;;  %v243_v33 = vld [vmem:[%s655_s1 + $0xa8] sm:$0xff] (!%p167_p3)  ;;  %v244_v35 = vld [vmem:[%s655_s1 + $0xb0] sm:$0xff] (!%p167_p3)  ;;  %v245_v36 = vld [vmem:[%s655_s1 + $0xb8] sm:$0xff] (!%p167_p3) }
   0xe   : > { %s663_s12 = smov (!%p200_p4, %s507_s12), 1  ;;  %438 = vmatprep.subr.bf16.mxu0 %v517_v3  ;;  %v463_v34 = vpack.c.bf16 %v243_v33, %v242_v32  ;;  %v466_v37 = vpack.c.bf16 %v245_v36, %v244_v35  ;;  %v246_v39 = vld [vmem:[%s656_s2] sm:$0x1f] }
   0xf   : > { %s431_s28 = sshll.u32 %s663_s12, 4  ;;  %s427_s23 = sshll.u32 %s663_s12, 3 }
  0x10   : > { %s580_s4 = scalar_lea.vmem %s654_s0, %s431_s28  ;;  %s219_s28 = scalar_lea.vmem %s657_s3, %s427_s23 }
  0x11   : > { %v221_v12 = vld [vmem:[%s580_s4 + $0x8] sm:$0x1f]  ;;  %440 = vmatpush1.bf16.msra.mxu0 %v439_v9  ;;  %v220_v38 = vld [vmem:[%s580_s4] sm:$0x1f] }
  0x12   : > { %428 = vmatprep.mubr.msk.f32.mxu0 %vm247_vm0, %v221_v12  ;;  %441 = vmatprep.subr.bf16.mxu0 %v517_v3 }
  0x15   : > { %443 = vmatpush1.bf16.msra.mxu0 %v442_v13 }
  0x16   : > { %444 = vmatprep.subr.bf16.mxu0 %v517_v3 }
  0x19   : > { %446 = vmatpush1.bf16.msra.mxu0 %v445_v16 }
  0x1a   : > { %447 = vmatprep.subr.bf16.mxu0 %v517_v3 }
  0x1d   : > { %449 = vmatpush1.bf16.msra.mxu0 %v448_v19 }
  0x1e   : > { %450 = vmatprep.subr.bf16.mxu0 %v517_v3 }
  0x21   : > { %452 = vmatpush1.bf16.msra.mxu0 %v451_v22 }
  0x22   : > { %453 = vmatprep.subr.bf16.mxu0 %v517_v3 }
  0x25   : > { %455 = vmatpush1.bf16.msra.mxu0 %v454_v25 }
  0x26   : > { %456 = vmatprep.subr.bf16.mxu0 %v517_v3 }
  0x29   : > { %458 = vmatpush1.bf16.msra.mxu0 %v457_v28 }
  0x2a   : > { %459 = vmatprep.subr.bf16.mxu0 %v517_v3 }
  0x2d   : > { %461 = vmatpush1.bf16.msra.mxu0 %v460_v31 }
  0x2e   : > { %462 = vmatprep.subr.bf16.mxu0 %v517_v3 }
  0x31   : > { %464 = vmatpush1.bf16.msra.mxu0 %v463_v34 }
  0x32   : > { %465 = vmatprep.subr.bf16.mxu0 %v517_v3 }
  0x35   : > { %467 = vmatpush1.bf16.msra.mxu0 %v466_v37 }
  0x38   : > { %316 = vmatmul.mubr.f32.vlgmr.msra.gmra.mrb[0].mxu0 %v220_v38 }
 0x10b   : > { %v317_v40 = vpop.f32.mrb[0].mxu0 }
 0x10c   : > { %v318_v41 = vadd.f32 %v317_v40, %v246_v39  ;;  %v319_v42 = vpop.f32.mrb[1].mxu0 }
 0x10e   : > { %322 = vst.msk [vmem:[%s219_s28] sm:$0x1f] %vm321_vm1, %v318_v41 }
 0x10f PF: > { %s13_s14 = sadd.s32 1, %s515_s14   ;;  %s658_s12 = smov %s511_s13 }
 0x110   : > { %p10_p5 = scmp.ge.s32.totalorder %s13_s14, 4   ;;  %s659_s13 = smov %s661_s15 }
 0x112   :  { %12 = sbr.rel (!%p10_p5) target bundleno = 2 (0x2), region = 65 }

</bundles_post_ra>
